<compile_context>
chip_gen: v5e
topology: v5e:2x2
jax: 0.10.0
libtpu: 0.0.40
codegen_flags: <defaults>
</compile_context>

<pallas_src>
import jax
import jax.numpy as jnp
from jax import lax
from jax.experimental import pallas as pl
from jax.experimental.pallas import tpu as pltpu


def _encoder_kernel(tok_ref, tbl_ref, whh_ref, bhn_ref, wfc_ref, bfc_ref,
                    out_ref, hid_ref):
    # tok_ref : (S*B, 2) int32; row = t*B + b; col0 = fwd token at time t,
    #           col1 = V + bwd token at time S-1-t.
    # tbl_ref : (2V, 6H)  fused (embedding @ W_ih + biases) table, gate-column
    #           layout [r_f, r_b, z_f, z_b, n_f, n_b].
    # whh_ref : (2H, 6H)  block-diagonal hidden weights (same column layout).
    # bhn_ref : (1, 2H)   [b_hn_fwd | b_hn_bwd].
    # wfc_ref : (2H, Ddec)  bfc_ref : (1, Ddec)
    # out_ref : (S, B, 2H)  per-step hidden [h_fwd | h_bwd_reversed-time]
    # hid_ref : (B, Ddec)
    S, B, H2 = out_ref.shape
    H = H2 // 2
    N = tok_ref.shape[0]
    V2 = tbl_ref.shape[0]

    # ---- fused embedding + both input-gate projections: ONE two-hot matmul ----
    # TODO(synk): one-hot matmul embedding only scales to toy vocab; for real
    # vocab sizes switch to scalar-prefetch row gather with emb left in HBM.
    idx = tok_ref[...]                                                   # (N, 2)
    iota = lax.broadcasted_iota(jnp.int32, (N, V2), 1)
    twohot = ((iota == idx[:, 0:1]) | (iota == idx[:, 1:2])).astype(jnp.float32)
    gi = jnp.dot(twohot, tbl_ref[...],
                 preferred_element_type=jnp.float32)                    # (N, 6H)
    # TODO(synk): nn.Dropout treated as identity (inference mode); training-mode
    # dropout would use pltpu.prng_seed / pltpu.prng_random_bits on `gi`'s source.

    whh = whh_ref[...]                                                   # (2H, 6H)
    bhn = jnp.broadcast_to(bhn_ref[...], (B, H2))   # broadcast hoisted out of loop

    G2, G4 = 2 * H, 4 * H

    def sig(x):
        # sigmoid via a single EUP op (tanh), no exp + divide on the serial path
        return 0.5 * jnp.tanh(0.5 * x) + 0.5

    h = jnp.zeros((B, H2), jnp.float32)              # h = [h_fwd | h_bwd]

    # S is small and static -> full unroll keeps LLO scheduler visibility.
    for k in range(S):
        gi_k = gi[k * B:(k + 1) * B, :]              # fwd time k, bwd time S-1-k
        gh = jnp.dot(h, whh, preferred_element_type=jnp.float32)        # (B, 6H)
        rz = sig(gi_k[:, :G4] + gh[:, :G4])          # both dirs' r and z at once
        r, z = rz[:, :G2], rz[:, G2:]
        n = jnp.tanh(gi_k[:, G4:] + r * (gh[:, G4:] + bhn))
        h = (1.0 - z) * n + z * h
        out_ref[k] = h.astype(out_ref.dtype)         # single lane-dense (B, 2H) store

    # ---- decoder-hidden projection: tanh(fc([h_fwd_final ; h_bwd_final])) ----
    hid_ref[...] = jnp.tanh(
        jnp.dot(h, wfc_ref[...], preferred_element_type=jnp.float32)
        + bfc_ref[...]).astype(hid_ref.dtype)


def _fuse_params(emb, wih_f, whh_f, bih_f, bhh_f, wih_b, whh_b, bih_b, bhh_b):
    """Wrapper-side (free XLA) fusion of embedding / GRU weights into kernel inputs."""
    E, H3 = wih_f.shape
    H = H3 // 3

    def split(w):   # (X, 3H) -> (r, z, n) each (X, H); PyTorch gate order
        return w[:, 0:H], w[:, H:2 * H], w[:, 2 * H:3 * H]

    wfr, wfz, wfn = split(wih_f)
    wbr, wbz, wbn = split(wih_b)
    hfr, hfz, hfn = split(whh_f)
    hbr, hbz, hbn = split(whh_b)
    bifr, bifz, bifn = split(bih_f)
    bibr, bibz, bibn = split(bih_b)
    bhfr, bhfz, bhfn = split(bhh_f)
    bhbr, bhbz, bhbn = split(bhh_b)

    zE = jnp.zeros((E, H), jnp.float32)
    zH = jnp.zeros((H, H), jnp.float32)
    z1 = jnp.zeros((1, H), jnp.float32)

    # Interleaved gate-column layout: [r_f, r_b, z_f, z_b, n_f, n_b].
    wf6 = jnp.concatenate([wfr, zE, wfz, zE, wfn, zE], axis=1)            # (E, 6H)
    wb6 = jnp.concatenate([zE, wbr, zE, wbz, zE, wbn], axis=1)
    # b_hr / b_hz fold legally into the input-side bias; b_hn must NOT.
    bf6 = jnp.concatenate([bifr + bhfr, z1, bifz + bhfz, z1, bifn, z1], axis=1)
    bb6 = jnp.concatenate([z1, bibr + bhbr, z1, bibz + bhbz, z1, bibn], axis=1)

    tbl = jnp.concatenate([emb @ wf6 + bf6, emb @ wb6 + bb6], axis=0)     # (2V, 6H)

    whh_blk = jnp.concatenate([
        jnp.concatenate([hfr, zH, hfz, zH, hfn, zH], axis=1),             # rows feed h_f
        jnp.concatenate([zH, hbr, zH, hbz, zH, hbn], axis=1),             # rows feed h_b
    ], axis=0)                                                            # (2H, 6H)

    bhn = jnp.concatenate([bhfn, bhbn], axis=1)                           # (1, 2H)
    return tbl, whh_blk, bhn


def encoder_forward(src, emb, wih_f, whh_f, bih_f, bhh_f,
                    wih_b, whh_b, bih_b, bhh_b, wfc, bfc):
    """src: (B, S) int32 tokens. Weights pre-transposed to (in, out); biases (1, out)."""
    B, S = src.shape
    V = emb.shape[0]
    H = whh_f.shape[0]
    Ddec = wfc.shape[1]

    tbl, whh_blk, bhn = _fuse_params(emb, wih_f, whh_f, bih_f, bhh_f,
                                     wih_b, whh_b, bih_b, bhh_b)

    # Token index array (S*B, 2), time-major rows (row = t*B + b):
    #   col0 = token at time t (forward), col1 = V + token at time S-1-t (backward).
    tok_f = jnp.transpose(src)                       # (S, B)
    tok_b = tok_f[::-1]                              # time-reversed
    tok_idx = jnp.stack([tok_f.reshape(-1), tok_b.reshape(-1) + V],
                        axis=1).astype(jnp.int32)    # (S*B, 2)

    vmem = pl.BlockSpec(memory_space=pltpu.MemorySpace.VMEM)
    out_steps, hidden = pl.pallas_call(
        _encoder_kernel,
        out_shape=(
            jax.ShapeDtypeStruct((S, B, 2 * H), jnp.float32),
            jax.ShapeDtypeStruct((B, Ddec), jnp.float32),
        ),
        in_specs=[vmem] * 6,
        out_specs=(vmem, vmem),
    )(tok_idx, tbl, whh_blk, bhn, wfc, bfc)

    # Layout plumbing back to the PyTorch convention: outputs (B, S, 2H).
    # out_steps[k, :, :H] is the forward output at time k; out_steps[k, :, H:]
    # is the backward output at time S-1-k (reversed), so flip its time axis.
    outputs = jnp.concatenate([out_steps[:, :, :H], out_steps[::-1, :, H:]], axis=-1)
    outputs = jnp.transpose(outputs, (1, 0, 2))
    return outputs, hidden


def encoder_reference(src, emb, wih_f, whh_f, bih_f, bhh_f,
                      wih_b, whh_b, bih_b, bhh_b, wfc, bfc):
    """Pure-JAX reference matching PyTorch bidirectional-GRU encoder semantics."""
    B, S = src.shape
    H = whh_f.shape[0]
    x = emb[src]                                          # (B, S, E)
    gi_f = jnp.einsum("bse,eg->bsg", x, wih_f) + bih_f    # (B, S, 3H)
    gi_b = jnp.einsum("bse,eg->bsg", x, wih_b) + bih_b

    def cell(gi_t, h, whh, bhh):
        gh = h @ whh + bhh
        r = jax.nn.sigmoid(gi_t[:, 0:H] + gh[:, 0:H])
        z = jax.nn.sigmoid(gi_t[:, H:2 * H] + gh[:, H:2 * H])
        n = jnp.tanh(gi_t[:, 2 * H:3 * H] + r * gh[:, 2 * H:3 * H])
        return (1.0 - z) * n + z * h

    h_f = jnp.zeros((B, H), jnp.float32)
    h_b = jnp.zeros((B, H), jnp.float32)
    outs_f = [None] * S
    outs_b = [None] * S
    for k in range(S):
        tf, tb = k, S - 1 - k
        h_f = cell(gi_f[:, tf], h_f, whh_f, bhh_f)
        h_b = cell(gi_b[:, tb], h_b, whh_b, bhh_b)
        outs_f[tf] = h_f
        outs_b[tb] = h_b
    outputs = jnp.concatenate(
        [jnp.stack(outs_f, axis=1), jnp.stack(outs_b, axis=1)], axis=-1)
    hidden = jnp.tanh(jnp.concatenate([h_f, h_b], axis=1) @ wfc + bfc)
    return outputs, hidden


if __name__ == "__main__":
    # Small shapes consistent with the module.
    WORD_NUM, EMB, HID, DEC_HID = 32, 16, 16, 32
    B, S = 2, 8
    H3 = 3 * HID

    key = jax.random.PRNGKey(0)
    keys = jax.random.split(key, 12)

    src = jax.random.randint(keys[0], (B, S), 0, WORD_NUM, dtype=jnp.int32)
    emb = jax.random.normal(keys[1], (WORD_NUM, EMB), dtype=jnp.float32)

    def uni(k, shape, fan_in):
        b = 1.0 / (fan_in ** 0.5)
        return jax.random.uniform(k, shape, jnp.float32, -b, b)

    # GRU params (PyTorch-style 1/sqrt(H) bounds), pre-transposed to (in, out).
    wih_f = uni(keys[2], (EMB, H3), HID)
    whh_f = uni(keys[3], (HID, H3), HID)
    bih_f = uni(keys[4], (1, H3), HID)
    bhh_f = uni(keys[5], (1, H3), HID)
    wih_b = uni(keys[6], (EMB, H3), HID)
    whh_b = uni(keys[7], (HID, H3), HID)
    bih_b = uni(keys[8], (1, H3), HID)
    bhh_b = uni(keys[9], (1, H3), HID)
    # fc: in_features = 2H, out_features = DEC_HID.
    wfc = uni(keys[10], (2 * HID, DEC_HID), 2 * HID)
    bfc = uni(keys[11], (1, DEC_HID), 2 * HID)

    outputs, hidden = encoder_forward(src, emb, wih_f, whh_f, bih_f, bhh_f,
                                      wih_b, whh_b, bih_b, bhh_b, wfc, bfc)
    outputs = jax.block_until_ready(outputs)
    hidden = jax.block_until_ready(hidden)

    ref_out, ref_hid = encoder_reference(src, emb, wih_f, whh_f, bih_f, bhh_f,
                                         wih_b, whh_b, bih_b, bhh_b, wfc, bfc)

    assert outputs.shape == (B, S, 2 * HID), outputs.shape
    assert hidden.shape == (B, DEC_HID), hidden.shape
    assert jnp.allclose(outputs, ref_out, atol=1e-5, rtol=1e-5), (outputs, ref_out)
    assert jnp.allclose(hidden, ref_hid, atol=1e-5, rtol=1e-5), (hidden, ref_hid)

    print("KERNEL_OK")
</pallas_src>

<mosaic_0001>
module attributes {stable_mosaic.version = 11 : i64} {
  func.func @_encoder_kernel(%arg0: memref<16x2xi32, #tpu.memory_space<vmem>>, %arg1: memref<64x96xf32, #tpu.memory_space<vmem>>, %arg2: memref<32x96xf32, #tpu.memory_space<vmem>>, %arg3: memref<1x32xf32, #tpu.memory_space<vmem>>, %arg4: memref<32x32xf32, #tpu.memory_space<vmem>>, %arg5: memref<1x32xf32, #tpu.memory_space<vmem>>, %arg6: memref<8x2x32xf32, #tpu.memory_space<vmem>>, %arg7: memref<2x32xf32, #tpu.memory_space<vmem>>) attributes {dimension_semantics = [], scalar_prefetch = 0 : i64, scratch_operands = 0 : i64, tpu.core_type = #tpu.core_type<tc>} {
    %c0 = arith.constant 0 : index
    %c0_0 = arith.constant 0 : index
    %0 = vector.load %arg0[%c0, %c0_0] : memref<16x2xi32, #tpu.memory_space<vmem>>, vector<16x2xi32>
    %1 = tpu.iota {dimensions = array<i32: 1>} : vector<16x64xi32>
    %2 = vector.extract_strided_slice %0 {offsets = [0, 0], sizes = [16, 1], strides = [1, 1]} : vector<16x2xi32> to vector<16x1xi32>
    %3 = vector.broadcast %2 : vector<16x1xi32> to vector<16x64xi32>
    %4 = arith.cmpi eq, %1, %3 : vector<16x64xi32>
    %5 = vector.extract_strided_slice %0 {offsets = [0, 1], sizes = [16, 1], strides = [1, 1]} : vector<16x2xi32> to vector<16x1xi32>
    %6 = vector.broadcast %5 : vector<16x1xi32> to vector<16x64xi32>
    %7 = arith.cmpi eq, %1, %6 : vector<16x64xi32>
    %8 = arith.ori %4, %7 : vector<16x64xi1>
    %9 = arith.extui %8 : vector<16x64xi1> to vector<16x64xi32>
    %10 = arith.sitofp %9 : vector<16x64xi32> to vector<16x64xf32>
    %c0_1 = arith.constant 0 : index
    %c0_2 = arith.constant 0 : index
    %11 = vector.load %arg1[%c0_1, %c0_2] : memref<64x96xf32, #tpu.memory_space<vmem>>, vector<64x96xf32>
    %cst = arith.constant dense<0.000000e+00> : vector<16x96xf32>
    %12 = tpu.matmul %10, %11, %cst {dimension_numbers = #tpu.dot_dimension_numbers<[1], [0], [0], [1], [0, 0, 1, 1], [], []>} : vector<16x64xf32>, vector<64x96xf32>, vector<16x96xf32> -> vector<16x96xf32>
    %c0_3 = arith.constant 0 : index
    %c0_4 = arith.constant 0 : index
    %13 = vector.load %arg2[%c0_3, %c0_4] : memref<32x96xf32, #tpu.memory_space<vmem>>, vector<32x96xf32>
    %c0_5 = arith.constant 0 : index
    %c0_6 = arith.constant 0 : index
    %14 = vector.load %arg3[%c0_5, %c0_6] : memref<1x32xf32, #tpu.memory_space<vmem>>, vector<1x32xf32>
    %15 = vector.shape_cast %14 : vector<1x32xf32> to vector<1x32xf32>
    %16 = vector.broadcast %15 : vector<1x32xf32> to vector<2x32xf32>
    %cst_7 = arith.constant 0.000000e+00 : f32
    %17 = vector.broadcast %cst_7 : f32 to vector<2x32xf32>
    %18 = vector.extract_strided_slice %12 {offsets = [0, 0], sizes = [2, 96], strides = [1, 1]} : vector<16x96xf32> to vector<2x96xf32>
    %cst_8 = arith.constant dense<0.000000e+00> : vector<2x96xf32>
    %19 = tpu.matmul %17, %13, %cst_8 {dimension_numbers = #tpu.dot_dimension_numbers<[1], [0], [0], [1], [0, 0, 1, 1], [], []>} : vector<2x32xf32>, vector<32x96xf32>, vector<2x96xf32> -> vector<2x96xf32>
    %20 = vector.extract_strided_slice %18 {offsets = [0, 0], sizes = [2, 64], strides = [1, 1]} : vector<2x96xf32> to vector<2x64xf32>
    %21 = vector.extract_strided_slice %19 {offsets = [0, 0], sizes = [2, 64], strides = [1, 1]} : vector<2x96xf32> to vector<2x64xf32>
    %22 = arith.addf %20, %21 : vector<2x64xf32>
    %cst_9 = arith.constant 5.000000e-01 : f32
    %23 = vector.broadcast %cst_9 : f32 to vector<2x64xf32>
    %24 = arith.mulf %23, %22 : vector<2x64xf32>
    %25 = math.tanh %24 : vector<2x64xf32>
    %cst_10 = arith.constant 5.000000e-01 : f32
    %26 = vector.broadcast %cst_10 : f32 to vector<2x64xf32>
    %27 = arith.mulf %26, %25 : vector<2x64xf32>
    %cst_11 = arith.constant 5.000000e-01 : f32
    %28 = vector.broadcast %cst_11 : f32 to vector<2x64xf32>
    %29 = arith.addf %27, %28 : vector<2x64xf32>
    %30 = vector.extract_strided_slice %29 {offsets = [0, 0], sizes = [2, 32], strides = [1, 1]} : vector<2x64xf32> to vector<2x32xf32>
    %31 = vector.extract_strided_slice %29 {offsets = [0, 32], sizes = [2, 32], strides = [1, 1]} : vector<2x64xf32> to vector<2x32xf32>
    %32 = vector.extract_strided_slice %18 {offsets = [0, 64], sizes = [2, 32], strides = [1, 1]} : vector<2x96xf32> to vector<2x32xf32>
    %33 = vector.extract_strided_slice %19 {offsets = [0, 64], sizes = [2, 32], strides = [1, 1]} : vector<2x96xf32> to vector<2x32xf32>
    %34 = arith.addf %33, %16 : vector<2x32xf32>
    %35 = arith.mulf %30, %34 : vector<2x32xf32>
    %36 = arith.addf %32, %35 : vector<2x32xf32>
    %37 = math.tanh %36 : vector<2x32xf32>
    %cst_12 = arith.constant 1.000000e+00 : f32
    %38 = vector.broadcast %cst_12 : f32 to vector<2x32xf32>
    %39 = arith.subf %38, %31 : vector<2x32xf32>
    %40 = arith.mulf %39, %37 : vector<2x32xf32>
    %41 = arith.mulf %31, %17 : vector<2x32xf32>
    %42 = arith.addf %40, %41 : vector<2x32xf32>
    %c0_13 = arith.constant 0 : index
    %c0_14 = arith.constant 0 : index
    %c0_15 = arith.constant 0 : index
    %43 = vector.load %arg6[%c0_13, %c0_14, %c0_15] : memref<8x2x32xf32, #tpu.memory_space<vmem>>, vector<1x2x32xf32>
    %44 = vector.shape_cast %43 : vector<1x2x32xf32> to vector<2x32xf32>
    %45 = vector.shape_cast %42 : vector<2x32xf32> to vector<1x2x32xf32>
    tpu.vector_store %arg6[%c0_13, %c0_14, %c0_15], %45 {strides = array<i32>} : memref<8x2x32xf32, #tpu.memory_space<vmem>>, vector<1x2x32xf32>,
    %46 = vector.extract_strided_slice %12 {offsets = [2, 0], sizes = [2, 96], strides = [1, 1]} : vector<16x96xf32> to vector<2x96xf32>
    %cst_16 = arith.constant dense<0.000000e+00> : vector<2x96xf32>
    %47 = tpu.matmul %42, %13, %cst_16 {dimension_numbers = #tpu.dot_dimension_numbers<[1], [0], [0], [1], [0, 0, 1, 1], [], []>} : vector<2x32xf32>, vector<32x96xf32>, vector<2x96xf32> -> vector<2x96xf32>
    %48 = vector.extract_strided_slice %46 {offsets = [0, 0], sizes = [2, 64], strides = [1, 1]} : vector<2x96xf32> to vector<2x64xf32>
    %49 = vector.extract_strided_slice %47 {offsets = [0, 0], sizes = [2, 64], strides = [1, 1]} : vector<2x96xf32> to vector<2x64xf32>
    %50 = arith.addf %48, %49 : vector<2x64xf32>
    %cst_17 = arith.constant 5.000000e-01 : f32
    %51 = vector.broadcast %cst_17 : f32 to vector<2x64xf32>
    %52 = arith.mulf %51, %50 : vector<2x64xf32>
    %53 = math.tanh %52 : vector<2x64xf32>
    %cst_18 = arith.constant 5.000000e-01 : f32
    %54 = vector.broadcast %cst_18 : f32 to vector<2x64xf32>
    %55 = arith.mulf %54, %53 : vector<2x64xf32>
    %cst_19 = arith.constant 5.000000e-01 : f32
    %56 = vector.broadcast %cst_19 : f32 to vector<2x64xf32>
    %57 = arith.addf %55, %56 : vector<2x64xf32>
    %58 = vector.extract_strided_slice %57 {offsets = [0, 0], sizes = [2, 32], strides = [1, 1]} : vector<2x64xf32> to vector<2x32xf32>
    %59 = vector.extract_strided_slice %57 {offsets = [0, 32], sizes = [2, 32], strides = [1, 1]} : vector<2x64xf32> to vector<2x32xf32>
    %60 = vector.extract_strided_slice %46 {offsets = [0, 64], sizes = [2, 32], strides = [1, 1]} : vector<2x96xf32> to vector<2x32xf32>
    %61 = vector.extract_strided_slice %47 {offsets = [0, 64], sizes = [2, 32], strides = [1, 1]} : vector<2x96xf32> to vector<2x32xf32>
    %62 = arith.addf %61, %16 : vector<2x32xf32>
    %63 = arith.mulf %58, %62 : vector<2x32xf32>
    %64 = arith.addf %60, %63 : vector<2x32xf32>
    %65 = math.tanh %64 : vector<2x32xf32>
    %cst_20 = arith.constant 1.000000e+00 : f32
    %66 = vector.broadcast %cst_20 : f32 to vector<2x32xf32>
    %67 = arith.subf %66, %59 : vector<2x32xf32>
    %68 = arith.mulf %67, %65 : vector<2x32xf32>
    %69 = arith.mulf %59, %42 : vector<2x32xf32>
    %70 = arith.addf %68, %69 : vector<2x32xf32>
    %c1 = arith.constant 1 : index
    %c0_21 = arith.constant 0 : index
    %c0_22 = arith.constant 0 : index
    %71 = vector.load %arg6[%c1, %c0_21, %c0_22] : memref<8x2x32xf32, #tpu.memory_space<vmem>>, vector<1x2x32xf32>
    %72 = vector.shape_cast %71 : vector<1x2x32xf32> to vector<2x32xf32>
    %73 = vector.shape_cast %70 : vector<2x32xf32> to vector<1x2x32xf32>
    tpu.vector_store %arg6[%c1, %c0_21, %c0_22], %73 {strides = array<i32>} : memref<8x2x32xf32, #tpu.memory_space<vmem>>, vector<1x2x32xf32>,
    %74 = vector.extract_strided_slice %12 {offsets = [4, 0], sizes = [2, 96], strides = [1, 1]} : vector<16x96xf32> to vector<2x96xf32>
    %cst_23 = arith.constant dense<0.000000e+00> : vector<2x96xf32>
    %75 = tpu.matmul %70, %13, %cst_23 {dimension_numbers = #tpu.dot_dimension_numbers<[1], [0], [0], [1], [0, 0, 1, 1], [], []>} : vector<2x32xf32>, vector<32x96xf32>, vector<2x96xf32> -> vector<2x96xf32>
    %76 = vector.extract_strided_slice %74 {offsets = [0, 0], sizes = [2, 64], strides = [1, 1]} : vector<2x96xf32> to vector<2x64xf32>
    %77 = vector.extract_strided_slice %75 {offsets = [0, 0], sizes = [2, 64], strides = [1, 1]} : vector<2x96xf32> to vector<2x64xf32>
    %78 = arith.addf %76, %77 : vector<2x64xf32>
    %cst_24 = arith.constant 5.000000e-01 : f32
    %79 = vector.broadcast %cst_24 : f32 to vector<2x64xf32>
    %80 = arith.mulf %79, %78 : vector<2x64xf32>
    %81 = math.tanh %80 : vector<2x64xf32>
    %cst_25 = arith.constant 5.000000e-01 : f32
    %82 = vector.broadcast %cst_25 : f32 to vector<2x64xf32>
    %83 = arith.mulf %82, %81 : vector<2x64xf32>
    %cst_26 = arith.constant 5.000000e-01 : f32
    %84 = vector.broadcast %cst_26 : f32 to vector<2x64xf32>
    %85 = arith.addf %83, %84 : vector<2x64xf32>
    %86 = vector.extract_strided_slice %85 {offsets = [0, 0], sizes = [2, 32], strides = [1, 1]} : vector<2x64xf32> to vector<2x32xf32>
    %87 = vector.extract_strided_slice %85 {offsets = [0, 32], sizes = [2, 32], strides = [1, 1]} : vector<2x64xf32> to vector<2x32xf32>
    %88 = vector.extract_strided_slice %74 {offsets = [0, 64], sizes = [2, 32], strides = [1, 1]} : vector<2x96xf32> to vector<2x32xf32>
    %89 = vector.extract_strided_slice %75 {offsets = [0, 64], sizes = [2, 32], strides = [1, 1]} : vector<2x96xf32> to vector<2x32xf32>
    %90 = arith.addf %89, %16 : vector<2x32xf32>
    %91 = arith.mulf %86, %90 : vector<2x32xf32>
    %92 = arith.addf %88, %91 : vector<2x32xf32>
    %93 = math.tanh %92 : vector<2x32xf32>
    %cst_27 = arith.constant 1.000000e+00 : f32
    %94 = vector.broadcast %cst_27 : f32 to vector<2x32xf32>
    %95 = arith.subf %94, %87 : vector<2x32xf32>
    %96 = arith.mulf %95, %93 : vector<2x32xf32>
    %97 = arith.mulf %87, %70 : vector<2x32xf32>
    %98 = arith.addf %96, %97 : vector<2x32xf32>
    %c2 = arith.constant 2 : index
    %c0_28 = arith.constant 0 : index
    %c0_29 = arith.constant 0 : index
    %99 = vector.load %arg6[%c2, %c0_28, %c0_29] : memref<8x2x32xf32, #tpu.memory_space<vmem>>, vector<1x2x32xf32>
    %100 = vector.shape_cast %99 : vector<1x2x32xf32> to vector<2x32xf32>
    %101 = vector.shape_cast %98 : vector<2x32xf32> to vector<1x2x32xf32>
    tpu.vector_store %arg6[%c2, %c0_28, %c0_29], %101 {strides = array<i32>} : memref<8x2x32xf32, #tpu.memory_space<vmem>>, vector<1x2x32xf32>,
    %102 = vector.extract_strided_slice %12 {offsets = [6, 0], sizes = [2, 96], strides = [1, 1]} : vector<16x96xf32> to vector<2x96xf32>
    %cst_30 = arith.constant dense<0.000000e+00> : vector<2x96xf32>
    %103 = tpu.matmul %98, %13, %cst_30 {dimension_numbers = #tpu.dot_dimension_numbers<[1], [0], [0], [1], [0, 0, 1, 1], [], []>} : vector<2x32xf32>, vector<32x96xf32>, vector<2x96xf32> -> vector<2x96xf32>
    %104 = vector.extract_strided_slice %102 {offsets = [0, 0], sizes = [2, 64], strides = [1, 1]} : vector<2x96xf32> to vector<2x64xf32>
    %105 = vector.extract_strided_slice %103 {offsets = [0, 0], sizes = [2, 64], strides = [1, 1]} : vector<2x96xf32> to vector<2x64xf32>
    %106 = arith.addf %104, %105 : vector<2x64xf32>
    %cst_31 = arith.constant 5.000000e-01 : f32
    %107 = vector.broadcast %cst_31 : f32 to vector<2x64xf32>
    %108 = arith.mulf %107, %106 : vector<2x64xf32>
    %109 = math.tanh %108 : vector<2x64xf32>
    %cst_32 = arith.constant 5.000000e-01 : f32
    %110 = vector.broadcast %cst_32 : f32 to vector<2x64xf32>
    %111 = arith.mulf %110, %109 : vector<2x64xf32>
    %cst_33 = arith.constant 5.000000e-01 : f32
    %112 = vector.broadcast %cst_33 : f32 to vector<2x64xf32>
    %113 = arith.addf %111, %112 : vector<2x64xf32>
    %114 = vector.extract_strided_slice %113 {offsets = [0, 0], sizes = [2, 32], strides = [1, 1]} : vector<2x64xf32> to vector<2x32xf32>
    %115 = vector.extract_strided_slice %113 {offsets = [0, 32], sizes = [2, 32], strides = [1, 1]} : vector<2x64xf32> to vector<2x32xf32>
    %116 = vector.extract_strided_slice %102 {offsets = [0, 64], sizes = [2, 32], strides = [1, 1]} : vector<2x96xf32> to vector<2x32xf32>
    %117 = vector.extract_strided_slice %103 {offsets = [0, 64], sizes = [2, 32], strides = [1, 1]} : vector<2x96xf32> to vector<2x32xf32>
    %118 = arith.addf %117, %16 : vector<2x32xf32>
    %119 = arith.mulf %114, %118 : vector<2x32xf32>
    %120 = arith.addf %116, %119 : vector<2x32xf32>
    %121 = math.tanh %120 : vector<2x32xf32>
    %cst_34 = arith.constant 1.000000e+00 : f32
    %122 = vector.broadcast %cst_34 : f32 to vector<2x32xf32>
    %123 = arith.subf %122, %115 : vector<2x32xf32>
    %124 = arith.mulf %123, %121 : vector<2x32xf32>
    %125 = arith.mulf %115, %98 : vector<2x32xf32>
    %126 = arith.addf %124, %125 : vector<2x32xf32>
    %c3 = arith.constant 3 : index
    %c0_35 = arith.constant 0 : index
    %c0_36 = arith.constant 0 : index
    %127 = vector.load %arg6[%c3, %c0_35, %c0_36] : memref<8x2x32xf32, #tpu.memory_space<vmem>>, vector<1x2x32xf32>
    %128 = vector.shape_cast %127 : vector<1x2x32xf32> to vector<2x32xf32>
    %129 = vector.shape_cast %126 : vector<2x32xf32> to vector<1x2x32xf32>
    tpu.vector_store %arg6[%c3, %c0_35, %c0_36], %129 {strides = array<i32>} : memref<8x2x32xf32, #tpu.memory_space<vmem>>, vector<1x2x32xf32>,
    %130 = vector.extract_strided_slice %12 {offsets = [8, 0], sizes = [2, 96], strides = [1, 1]} : vector<16x96xf32> to vector<2x96xf32>
    %cst_37 = arith.constant dense<0.000000e+00> : vector<2x96xf32>
    %131 = tpu.matmul %126, %13, %cst_37 {dimension_numbers = #tpu.dot_dimension_numbers<[1], [0], [0], [1], [0, 0, 1, 1], [], []>} : vector<2x32xf32>, vector<32x96xf32>, vector<2x96xf32> -> vector<2x96xf32>
    %132 = vector.extract_strided_slice %130 {offsets = [0, 0], sizes = [2, 64], strides = [1, 1]} : vector<2x96xf32> to vector<2x64xf32>
    %133 = vector.extract_strided_slice %131 {offsets = [0, 0], sizes = [2, 64], strides = [1, 1]} : vector<2x96xf32> to vector<2x64xf32>
    %134 = arith.addf %132, %133 : vector<2x64xf32>
    %cst_38 = arith.constant 5.000000e-01 : f32
    %135 = vector.broadcast %cst_38 : f32 to vector<2x64xf32>
    %136 = arith.mulf %135, %134 : vector<2x64xf32>
    %137 = math.tanh %136 : vector<2x64xf32>
    %cst_39 = arith.constant 5.000000e-01 : f32
    %138 = vector.broadcast %cst_39 : f32 to vector<2x64xf32>
    %139 = arith.mulf %138, %137 : vector<2x64xf32>
    %cst_40 = arith.constant 5.000000e-01 : f32
    %140 = vector.broadcast %cst_40 : f32 to vector<2x64xf32>
    %141 = arith.addf %139, %140 : vector<2x64xf32>
    %142 = vector.extract_strided_slice %141 {offsets = [0, 0], sizes = [2, 32], strides = [1, 1]} : vector<2x64xf32> to vector<2x32xf32>
    %143 = vector.extract_strided_slice %141 {offsets = [0, 32], sizes = [2, 32], strides = [1, 1]} : vector<2x64xf32> to vector<2x32xf32>
    %144 = vector.extract_strided_slice %130 {offsets = [0, 64], sizes = [2, 32], strides = [1, 1]} : vector<2x96xf32> to vector<2x32xf32>
    %145 = vector.extract_strided_slice %131 {offsets = [0, 64], sizes = [2, 32], strides = [1, 1]} : vector<2x96xf32> to vector<2x32xf32>
    %146 = arith.addf %145, %16 : vector<2x32xf32>
    %147 = arith.mulf %142, %146 : vector<2x32xf32>
    %148 = arith.addf %144, %147 : vector<2x32xf32>
    %149 = math.tanh %148 : vector<2x32xf32>
    %cst_41 = arith.constant 1.000000e+00 : f32
    %150 = vector.broadcast %cst_41 : f32 to vector<2x32xf32>
    %151 = arith.subf %150, %143 : vector<2x32xf32>
    %152 = arith.mulf %151, %149 : vector<2x32xf32>
    %153 = arith.mulf %143, %126 : vector<2x32xf32>
    %154 = arith.addf %152, %153 : vector<2x32xf32>
    %c4 = arith.constant 4 : index
    %c0_42 = arith.constant 0 : index
    %c0_43 = arith.constant 0 : index
    %155 = vector.load %arg6[%c4, %c0_42, %c0_43] : memref<8x2x32xf32, #tpu.memory_space<vmem>>, vector<1x2x32xf32>
    %156 = vector.shape_cast %155 : vector<1x2x32xf32> to vector<2x32xf32>
    %157 = vector.shape_cast %154 : vector<2x32xf32> to vector<1x2x32xf32>
    tpu.vector_store %arg6[%c4, %c0_42, %c0_43], %157 {strides = array<i32>} : memref<8x2x32xf32, #tpu.memory_space<vmem>>, vector<1x2x32xf32>,
    %158 = vector.extract_strided_slice %12 {offsets = [10, 0], sizes = [2, 96], strides = [1, 1]} : vector<16x96xf32> to vector<2x96xf32>
    %cst_44 = arith.constant dense<0.000000e+00> : vector<2x96xf32>
    %159 = tpu.matmul %154, %13, %cst_44 {dimension_numbers = #tpu.dot_dimension_numbers<[1], [0], [0], [1], [0, 0, 1, 1], [], []>} : vector<2x32xf32>, vector<32x96xf32>, vector<2x96xf32> -> vector<2x96xf32>
    %160 = vector.extract_strided_slice %158 {offsets = [0, 0], sizes = [2, 64], strides = [1, 1]} : vector<2x96xf32> to vector<2x64xf32>
    %161 = vector.extract_strided_slice %159 {offsets = [0, 0], sizes = [2, 64], strides = [1, 1]} : vector<2x96xf32> to vector<2x64xf32>
    %162 = arith.addf %160, %161 : vector<2x64xf32>
    %cst_45 = arith.constant 5.000000e-01 : f32
    %163 = vector.broadcast %cst_45 : f32 to vector<2x64xf32>
    %164 = arith.mulf %163, %162 : vector<2x64xf32>
    %165 = math.tanh %164 : vector<2x64xf32>
    %cst_46 = arith.constant 5.000000e-01 : f32
    %166 = vector.broadcast %cst_46 : f32 to vector<2x64xf32>
    %167 = arith.mulf %166, %165 : vector<2x64xf32>
    %cst_47 = arith.constant 5.000000e-01 : f32
    %168 = vector.broadcast %cst_47 : f32 to vector<2x64xf32>
    %169 = arith.addf %167, %168 : vector<2x64xf32>
    %170 = vector.extract_strided_slice %169 {offsets = [0, 0], sizes = [2, 32], strides = [1, 1]} : vector<2x64xf32> to vector<2x32xf32>
    %171 = vector.extract_strided_slice %169 {offsets = [0, 32], sizes = [2, 32], strides = [1, 1]} : vector<2x64xf32> to vector<2x32xf32>
    %172 = vector.extract_strided_slice %158 {offsets = [0, 64], sizes = [2, 32], strides = [1, 1]} : vector<2x96xf32> to vector<2x32xf32>
    %173 = vector.extract_strided_slice %159 {offsets = [0, 64], sizes = [2, 32], strides = [1, 1]} : vector<2x96xf32> to vector<2x32xf32>
    %174 = arith.addf %173, %16 : vector<2x32xf32>
    %175 = arith.mulf %170, %174 : vector<2x32xf32>
    %176 = arith.addf %172, %175 : vector<2x32xf32>
    %177 = math.tanh %176 : vector<2x32xf32>
    %cst_48 = arith.constant 1.000000e+00 : f32
    %178 = vector.broadcast %cst_48 : f32 to vector<2x32xf32>
    %179 = arith.subf %178, %171 : vector<2x32xf32>
    %180 = arith.mulf %179, %177 : vector<2x32xf32>
    %181 = arith.mulf %171, %154 : vector<2x32xf32>
    %182 = arith.addf %180, %181 : vector<2x32xf32>
    %c5 = arith.constant 5 : index
    %c0_49 = arith.constant 0 : index
    %c0_50 = arith.constant 0 : index
    %183 = vector.load %arg6[%c5, %c0_49, %c0_50] : memref<8x2x32xf32, #tpu.memory_space<vmem>>, vector<1x2x32xf32>
    %184 = vector.shape_cast %183 : vector<1x2x32xf32> to vector<2x32xf32>
    %185 = vector.shape_cast %182 : vector<2x32xf32> to vector<1x2x32xf32>
    tpu.vector_store %arg6[%c5, %c0_49, %c0_50], %185 {strides = array<i32>} : memref<8x2x32xf32, #tpu.memory_space<vmem>>, vector<1x2x32xf32>,
    %186 = vector.extract_strided_slice %12 {offsets = [12, 0], sizes = [2, 96], strides = [1, 1]} : vector<16x96xf32> to vector<2x96xf32>
    %cst_51 = arith.constant dense<0.000000e+00> : vector<2x96xf32>
    %187 = tpu.matmul %182, %13, %cst_51 {dimension_numbers = #tpu.dot_dimension_numbers<[1], [0], [0], [1], [0, 0, 1, 1], [], []>} : vector<2x32xf32>, vector<32x96xf32>, vector<2x96xf32> -> vector<2x96xf32>
    %188 = vector.extract_strided_slice %186 {offsets = [0, 0], sizes = [2, 64], strides = [1, 1]} : vector<2x96xf32> to vector<2x64xf32>
    %189 = vector.extract_strided_slice %187 {offsets = [0, 0], sizes = [2, 64], strides = [1, 1]} : vector<2x96xf32> to vector<2x64xf32>
    %190 = arith.addf %188, %189 : vector<2x64xf32>
    %cst_52 = arith.constant 5.000000e-01 : f32
    %191 = vector.broadcast %cst_52 : f32 to vector<2x64xf32>
    %192 = arith.mulf %191, %190 : vector<2x64xf32>
    %193 = math.tanh %192 : vector<2x64xf32>
    %cst_53 = arith.constant 5.000000e-01 : f32
    %194 = vector.broadcast %cst_53 : f32 to vector<2x64xf32>
    %195 = arith.mulf %194, %193 : vector<2x64xf32>
    %cst_54 = arith.constant 5.000000e-01 : f32
    %196 = vector.broadcast %cst_54 : f32 to vector<2x64xf32>
    %197 = arith.addf %195, %196 : vector<2x64xf32>
    %198 = vector.extract_strided_slice %197 {offsets = [0, 0], sizes = [2, 32], strides = [1, 1]} : vector<2x64xf32> to vector<2x32xf32>
    %199 = vector.extract_strided_slice %197 {offsets = [0, 32], sizes = [2, 32], strides = [1, 1]} : vector<2x64xf32> to vector<2x32xf32>
    %200 = vector.extract_strided_slice %186 {offsets = [0, 64], sizes = [2, 32], strides = [1, 1]} : vector<2x96xf32> to vector<2x32xf32>
    %201 = vector.extract_strided_slice %187 {offsets = [0, 64], sizes = [2, 32], strides = [1, 1]} : vector<2x96xf32> to vector<2x32xf32>
    %202 = arith.addf %201, %16 : vector<2x32xf32>
    %203 = arith.mulf %198, %202 : vector<2x32xf32>
    %204 = arith.addf %200, %203 : vector<2x32xf32>
    %205 = math.tanh %204 : vector<2x32xf32>
    %cst_55 = arith.constant 1.000000e+00 : f32
    %206 = vector.broadcast %cst_55 : f32 to vector<2x32xf32>
    %207 = arith.subf %206, %199 : vector<2x32xf32>
    %208 = arith.mulf %207, %205 : vector<2x32xf32>
    %209 = arith.mulf %199, %182 : vector<2x32xf32>
    %210 = arith.addf %208, %209 : vector<2x32xf32>
    %c6 = arith.constant 6 : index
    %c0_56 = arith.constant 0 : index
    %c0_57 = arith.constant 0 : index
    %211 = vector.load %arg6[%c6, %c0_56, %c0_57] : memref<8x2x32xf32, #tpu.memory_space<vmem>>, vector<1x2x32xf32>
    %212 = vector.shape_cast %211 : vector<1x2x32xf32> to vector<2x32xf32>
    %213 = vector.shape_cast %210 : vector<2x32xf32> to vector<1x2x32xf32>
    tpu.vector_store %arg6[%c6, %c0_56, %c0_57], %213 {strides = array<i32>} : memref<8x2x32xf32, #tpu.memory_space<vmem>>, vector<1x2x32xf32>,
    %214 = vector.extract_strided_slice %12 {offsets = [14, 0], sizes = [2, 96], strides = [1, 1]} : vector<16x96xf32> to vector<2x96xf32>
    %cst_58 = arith.constant dense<0.000000e+00> : vector<2x96xf32>
    %215 = tpu.matmul %210, %13, %cst_58 {dimension_numbers = #tpu.dot_dimension_numbers<[1], [0], [0], [1], [0, 0, 1, 1], [], []>} : vector<2x32xf32>, vector<32x96xf32>, vector<2x96xf32> -> vector<2x96xf32>
    %216 = vector.extract_strided_slice %214 {offsets = [0, 0], sizes = [2, 64], strides = [1, 1]} : vector<2x96xf32> to vector<2x64xf32>
    %217 = vector.extract_strided_slice %215 {offsets = [0, 0], sizes = [2, 64], strides = [1, 1]} : vector<2x96xf32> to vector<2x64xf32>
    %218 = arith.addf %216, %217 : vector<2x64xf32>
    %cst_59 = arith.constant 5.000000e-01 : f32
    %219 = vector.broadcast %cst_59 : f32 to vector<2x64xf32>
    %220 = arith.mulf %219, %218 : vector<2x64xf32>
    %221 = math.tanh %220 : vector<2x64xf32>
    %cst_60 = arith.constant 5.000000e-01 : f32
    %222 = vector.broadcast %cst_60 : f32 to vector<2x64xf32>
    %223 = arith.mulf %222, %221 : vector<2x64xf32>
    %cst_61 = arith.constant 5.000000e-01 : f32
    %224 = vector.broadcast %cst_61 : f32 to vector<2x64xf32>
    %225 = arith.addf %223, %224 : vector<2x64xf32>
    %226 = vector.extract_strided_slice %225 {offsets = [0, 0], sizes = [2, 32], strides = [1, 1]} : vector<2x64xf32> to vector<2x32xf32>
    %227 = vector.extract_strided_slice %225 {offsets = [0, 32], sizes = [2, 32], strides = [1, 1]} : vector<2x64xf32> to vector<2x32xf32>
    %228 = vector.extract_strided_slice %214 {offsets = [0, 64], sizes = [2, 32], strides = [1, 1]} : vector<2x96xf32> to vector<2x32xf32>
    %229 = vector.extract_strided_slice %215 {offsets = [0, 64], sizes = [2, 32], strides = [1, 1]} : vector<2x96xf32> to vector<2x32xf32>
    %230 = arith.addf %229, %16 : vector<2x32xf32>
    %231 = arith.mulf %226, %230 : vector<2x32xf32>
    %232 = arith.addf %228, %231 : vector<2x32xf32>
    %233 = math.tanh %232 : vector<2x32xf32>
    %cst_62 = arith.constant 1.000000e+00 : f32
    %234 = vector.broadcast %cst_62 : f32 to vector<2x32xf32>
    %235 = arith.subf %234, %227 : vector<2x32xf32>
    %236 = arith.mulf %235, %233 : vector<2x32xf32>
    %237 = arith.mulf %227, %210 : vector<2x32xf32>
    %238 = arith.addf %236, %237 : vector<2x32xf32>
    %c7 = arith.constant 7 : index
    %c0_63 = arith.constant 0 : index
    %c0_64 = arith.constant 0 : index
    %239 = vector.load %arg6[%c7, %c0_63, %c0_64] : memref<8x2x32xf32, #tpu.memory_space<vmem>>, vector<1x2x32xf32>
    %240 = vector.shape_cast %239 : vector<1x2x32xf32> to vector<2x32xf32>
    %241 = vector.shape_cast %238 : vector<2x32xf32> to vector<1x2x32xf32>
    tpu.vector_store %arg6[%c7, %c0_63, %c0_64], %241 {strides = array<i32>} : memref<8x2x32xf32, #tpu.memory_space<vmem>>, vector<1x2x32xf32>,
    %c0_65 = arith.constant 0 : index
    %c0_66 = arith.constant 0 : index
    %242 = vector.load %arg4[%c0_65, %c0_66] : memref<32x32xf32, #tpu.memory_space<vmem>>, vector<32x32xf32>
    %cst_67 = arith.constant dense<0.000000e+00> : vector<2x32xf32>
    %243 = tpu.matmul %238, %242, %cst_67 {dimension_numbers = #tpu.dot_dimension_numbers<[1], [0], [0], [1], [0, 0, 1, 1], [], []>} : vector<2x32xf32>, vector<32x32xf32>, vector<2x32xf32> -> vector<2x32xf32>
    %c0_68 = arith.constant 0 : index
    %c0_69 = arith.constant 0 : index
    %244 = vector.load %arg5[%c0_68, %c0_69] : memref<1x32xf32, #tpu.memory_space<vmem>>, vector<1x32xf32>
    %245 = vector.broadcast %244 : vector<1x32xf32> to vector<2x32xf32>
    %246 = arith.addf %243, %245 : vector<2x32xf32>
    %247 = math.tanh %246 : vector<2x32xf32>
    %c0_70 = arith.constant 0 : index
    %c0_71 = arith.constant 0 : index
    %248 = vector.load %arg7[%c0_70, %c0_71] : memref<2x32xf32, #tpu.memory_space<vmem>>, vector<2x32xf32>
    tpu.vector_store %arg7[%c0_70, %c0_71], %247 {strides = array<i32>} : memref<2x32xf32, #tpu.memory_space<vmem>>, vector<2x32xf32>,
    return
  }
}

</mosaic_0001>

<bundles_post_ra>
// kernel: tpu_custom_call.1
= control target key start
LH: loop header
LB: loop body
LE: loop exit
PB: predicated region body
PF: predicated region fallthrough
CT: control target
= control target key end

     0   :  { %13 = vsyncpa [#allocation3], 0  ;;  %s1119_s0 = inlined_call_operand.vmem [shape: s32[16,2], index: 0, kind: input, shape index: {}]   ;;  %s1120_s1 = inlined_call_operand.hbm [shape: f32[64,96], index: 1, kind: input, shape index: {}]   ;;  %s1121_s2 = inlined_call_operand.hbm [shape: f32[32,96], index: 2, kind: input, shape index: {}]   ;;  %s1122_s3 = inlined_call_operand.vmem [shape: f32[1,32], index: 3, kind: input, shape index: {}]   ;;  %s1123_s4 = inlined_call_operand.hbm [shape: f32[32,32], index: 4, kind: input, shape index: {}]   ;;  %s1124_s5 = inlined_call_operand.vmem [shape: f32[1,32], index: 5, kind: input, shape index: {}]   ;;  %s1125_s6 = inlined_call_operand.hbm [shape: f32[8,2,32], index: 6, kind: output, shape index: {0}]   ;;  %s1126_s7 = inlined_call_operand.hbm [shape: f32[2,32], index: 7, kind: output, shape index: {1}]  }
   0x1   :  { %14 = vsyncpa [#allocation6], 0 }
   0x2   :  { %15 = vsyncpa [#allocation4], 0 }
   0x3   :  { %16 = vsyncpa [#allocation10], 0  ;;  %s36_s26 = sshll.u32 %s1121_s2, 4  ;;  %s893_s27 = smov [#allocation5]   ;;  %s37_s26 = int_to_ptr.hbm [resolvable:$true] %s36_s26 }
   0x4   :  { %s38_s28 = sshll.u32 %s893_s27, 4  ;;  %s23_s8 = sshll.u32 %s1120_s1, 4  ;;  %s39_s28 = int_to_ptr.vmem [resolvable:$true] %s38_s28  ;;  %s24_s8 = int_to_ptr.hbm [resolvable:$true] %s23_s8 }
   0x5   :  { %s894_s9 = smov 128   ;;  %s895_s10 = smov 8  }
   0x6   :  { %44 = dma.hbm_to_vmem [thread:$0]  %s37_s26, 512, %s39_s28, [#allocation6], %s894_s9, %s894_s9, %s895_s10  }
   0x7   :  { %s896_s11 = smov [#allocation2]   ;;  %s51_s15 = sshll.u32 %s1123_s4, 4  ;;  %s52_s15 = int_to_ptr.hbm [resolvable:$true] %s51_s15 }
   0x8   :  { %s25_s12 = sshll.u32 %s896_s11, 4  ;;  %s897_s2 = smov [#allocation7]   ;;  %s26_s12 = int_to_ptr.vmem [resolvable:$true] %s25_s12 }
   0x9   :  { %31 = dma.hbm_to_vmem [thread:$0]  %s24_s8, 1024, %s26_s12, [#allocation3], %s894_s9, %s894_s9, %s895_s10  }
   0xa   :  { %s53_s16 = sshll.u32 %s897_s2, 4  ;;  %s54_s16 = int_to_ptr.vmem [resolvable:$true] %s53_s16 }
   0xb   :  { %59 = dma.hbm_to_vmem [thread:$0]  %s52_s15, 512, %s54_s16, [#allocation6], %s894_s9, %s894_s9, %s895_s10  }
   0xc   :  { %885 = dma.done.wait [#allocation3], 1024  }
   0xd   :  { %886 = vsyncadd [#allocation3], 4294966272 }
   0xe   :  { %887 = dma.done.wait [#allocation6], 1024  }
   0xf   :  { %888 = vsyncadd [#allocation6], 4294966272  ;;  %v898_v0 = vmov 0   ;;  %v74_v1 = vld [vmem:[%s1119_s0] sm:$0xff]  ;;  %v959_v2 = vld [vmem:[#allocation5 + $0x18] sm:$0xff]  ;;  %s899_s19 = smov 64   ;;  %v76_v18 = vlaneseq }
  0x10   :  { %726 = vset.pattern.permute.xlu0 %v898_v0  ;;  %728 = vset.pattern.permute.xlu2 %v898_v0  ;;  %v961_v3 = vld [vmem:[#allocation5 + $0x10] sm:$0xff]  ;;  %v964_v4 = vld [vmem:[#allocation5 + $0x8] sm:$0xff]  ;;  %v729_v5 = vld [vmem:[%s1122_s3] ss:$0 sm:$0xff]  ;;  %v900_v9 = vmov 0.0   ;;  %v901_v10 = vmov 1  }
  0x11   :  { %79 = vperm.xlu0 %726, %v74_v1   ;;  %161 = vmatpush.msra.mxu1 %v959_v2  ;;  %v107_v6 = vld [vmem:[#allocation2 + $0x38] sm:$0xff]  ;;  %v106_v7 = vld [vmem:[#allocation2 + $0x30] sm:$0xff]  ;;  %v972_v8 = vld [vmem:[#allocation5] sm:$0xff]  ;;  %v1000_v19 = vand.u32 127, %v76_v18  ;;  %vm108_vm2 = vcmask 523264   ;;  %s902_s3 = smov 96  }
  0x12   :  { %217 = vmatpush.msra.mxu2 %v959_v2  ;;  %280 = vmatpush.msra.mxu3 %v959_v2  ;;  %v105_v11 = vld [vmem:[#allocation2 + $0x28] sm:$0xff]  ;;  %v104_v12 = vld [vmem:[#allocation2 + $0x20] sm:$0xff]  ;;  %v103_v13 = vld [vmem:[#allocation2 + $0x18] sm:$0xff]  ;;  %vm201_vm4 = vcmask 254976   ;;  %vm145_vm5 = vcmask 261120   ;;  %vm261_vm9 = vcmask 257026  }
  0x13   :  { %162 = vmatpush.msra.mxu1 %v961_v3  ;;  %123 = vmatpush.msra.mxu0 %v107_v6  ;;  %v102_v14 = vld [vmem:[#allocation2 + $0x10] sm:$0xff]  ;;  %v101_v15 = vld [vmem:[#allocation2 + $0x8] sm:$0xff]  ;;  %v100_v16 = vld [vmem:[#allocation2] sm:$0xff]  ;;  %vm324_vm10 = vcmask 259076   ;;  %vm387_vm11 = vcmask 261126   ;;  %s670_s25 = sshll.u32 %s1125_s6, 4  ;;  %s671_s25 = int_to_ptr.hbm [resolvable:$true] %s670_s25 }
  0x14   :  { %174 = vrot.lane.b32.xlu1 %v729_v5, %s899_s19  ;;  %218 = vmatpush.msra.mxu2 %v961_v3  ;;  %s904_s26 = smov 32   ;;  %s905_s27 = smov 2  }
  0x15   :  { %163 = vmatpush.msra.mxu1 %v964_v4  ;;  %124 = vmatpush.msra.mxu0 %v106_v7  ;;  %s906_s30 = smov [#allocation9]   ;;  %s684_s6 = sshll.u32 %s1126_s7, 4  ;;  %s685_s6 = int_to_ptr.hbm [resolvable:$true] %s684_s6 }
  0x16   :  { %219 = vmatpush.msra.mxu2 %v964_v4  ;;  %281 = vmatpush.msra.mxu3 %v961_v3  ;;  %s682_s8 = sshll.u32 %s906_s30, 4  ;;  %s683_s8 = int_to_ptr.vmem [resolvable:$true] %s682_s8 }
  0x17   :  { %164 = vmatpush.msra.mxu1 %v972_v8  ;;  %125 = vmatpush.msra.mxu0 %v105_v11 }
  0x18   :  { %165 = vmatmul.f32.vlgmr.msra.gmra.mxu1 %v900_v9  ;;  %220 = vmatpush.msra.mxu2 %v972_v8 }
  0x19   :  { %727 = vset.pattern.permute.xlu0 %v901_v10  ;;  %282 = vmatpush.msra.mxu3 %v964_v4 }
  0x1a   :  { %87 = vperm.xlu0 %727, %v74_v1   ;;  %343 = vmatpush.msrb.mxu1 %v959_v2 }
  0x1b   :  { %283 = vmatpush.msra.mxu3 %v972_v8  ;;  %406 = vmatpush.msrb.mxu2 %v959_v2 }
  0x1c   :  { %344 = vmatpush.msrb.mxu1 %v961_v3  ;;  %126 = vmatpush.msra.mxu0 %v104_v12 }
  0x1d   :  { %460 = vmatpush.msrb.mxu3 %v959_v2  ;;  %407 = vmatpush.msrb.mxu2 %v961_v3 }
  0x1e   :  { %345 = vmatpush.msrb.mxu1 %v964_v4  ;;  %127 = vmatpush.msra.mxu0 %v103_v13 }
  0x1f   :  { %461 = vmatpush.msrb.mxu3 %v961_v3  ;;  %408 = vmatpush.msrb.mxu2 %v964_v4 }
  0x20   :  { %346 = vmatpush.msrb.mxu1 %v972_v8  ;;  %128 = vmatpush.msra.mxu0 %v102_v14 }
  0x21   :  { %462 = vmatpush.msrb.mxu3 %v964_v4  ;;  %409 = vmatpush.msrb.mxu2 %v972_v8 }
  0x22   :  { %522 = vmatpush.msra.mxu1 %v959_v2  ;;  %129 = vmatpush.msra.mxu0 %v101_v15 }
  0x23   :  { %463 = vmatpush.msrb.mxu3 %v972_v8 }
  0x24   :  { %523 = vmatpush.msra.mxu1 %v961_v3  ;;  %130 = vmatpush.msra.mxu0 %v100_v16 }
  0x26   :  { %524 = vmatpush.msra.mxu1 %v964_v4 }
  0x28   :  { %525 = vmatpush.msra.mxu1 %v972_v8 }
  0x83   :  { %v80_v17 = vpop.permute.xlu0 %79 }
  0x84   :  { %vm84_vm0 = vcmp.eq.s32.totalorder %v1000_v19, %v80_v17 }
  0x86   :  { %v1006_v22 = vpop.permute.xlu1 %174 }
  0x8c   :  { %v88_v20 = vpop.permute.xlu0 %87 }
  0x8d   :  { %vm92_vm1 = vcmp.eq.s32.totalorder %v1000_v19, %v88_v20 }
  0x8e   :  { %vm94_vm3 = vmor %vm84_vm0, %vm92_vm1 }
  0x8f   :  { %v700_v21 = vsel %vm94_vm3, 1.0, %v900_v9 }
  0x90   :  { %702 = vmatmul.msk.f32.vlgmr.msra.gmra.mxu0 %vm108_vm2, %v700_v21 }
  0x95   :  { %v166_v23 = vpop.f32.mrf.mxu1 }
  0x96   :  { %v177_v24 = vadd.f32 %v1006_v22, %v166_v23 }
  0x98   :  { %179 = vrot.lane.b32.xlu1 %v177_v24, %s899_s19 }
 0x10a   :  { %v180_v30 = vpop.permute.xlu1 %179 }
 0x10d   :  { %v1010_v25 = vpop.f32.mrf.mxu0 }
 0x10e   :  { %v169_v26 = vadd.f32 %v166_v23, %v1010_v25 }
 0x110   :  { %v170_v27 = vmul.f32 0.5, %v169_v26 }
 0x112   :  { %731 = vtanh.f32 %v170_v27 }
 0x118   :  { %v732_v28 = vpop.eup %731 }
 0x119   :  { %v172_v29 = vmul.f32 0.5, %v732_v28 }
 0x11b   :  { %v173_v31 = vadd.f32 0.5, %v172_v29 }
 0x11d   :  { %v182_v32 = vmul.f32 %v180_v30, %v173_v31  ;;  %v189_v36 = vsub.f32 1.0, %v173_v31  ;;  %v195_v38 = vmul.f32 0.0, %v173_v31 }
 0x11f   :  { %184 = vrot.lane.b32.xlu2 %v182_v32, %s899_s19 }
 0x179   :  { %v185_v33 = vpop.permute.xlu2 %184 }
 0x17a   :  { %v187_v34 = vadd.f32 %v185_v33, %v1010_v25 }
 0x17c   :  { %733 = vtanh.f32 %v187_v34 }
 0x182   :  { %v734_v35 = vpop.eup %733 }
 0x183   :  { %191 = vrot.lane.b32.xlu2 %v734_v35, %s902_s3 }
 0x1dd   :  { %v192_v37 = vpop.permute.xlu2 %191 }
 0x1de   :  { %v194_v39 = vmul.f32 %v192_v37, %v189_v36  ;;  %v75_v37 = vld [vmem:[%s1119_s0 + $0x8] sm:$0xff]  ;;  %s903_s0 = smov [#allocation8]  }
 0x1df   :  { %s668_s22 = sshll.u32 %s903_s0, 4  ;;  %s669_s22 = int_to_ptr.vmem [resolvable:$true] %s668_s22 }
 0x1e0   :  { %v196_v40 = vadd.f32 %v195_v38, %v194_v39 }
 0x1e2   :  { %198 = vrot.lane.b32.xlu1 %v196_v40, %s902_s3  ;;  %v252_v56 = vrot.slane %v196_v40, 6 }
 0x254   :  { %v199_v41 = vpop.permute.xlu1 %198 }
 0x255   :  { %202 = vst.msk [vmem:[#allocation8] sm:$0x3] %vm201_vm4, %v199_v41  ;;  %704 = vmatmul.msk.f32.vlgmr.msra.gmra.mxu2 %vm145_vm5, %v199_v41 }
 0x256   :  { %584 = vmatpush.msra.mxu2 %v959_v2 }
 0x258   :  { %585 = vmatpush.msra.mxu2 %v961_v3 }
 0x25a   :  { %586 = vmatpush.msra.mxu2 %v964_v4 }
 0x25c   :  { %587 = vmatpush.msra.mxu2 %v972_v8 }
 0x2d8   :  { %v222_v42 = vpop.f32.mrf.mxu2 }
 0x2d9   :  { %v233_v43 = vadd.f32 %v222_v42, %v1006_v22  ;;  %v226_v45 = vrot.slane %v222_v42, 6 }
 0x2db   :  { %v235_v44 = vrot.slane %v233_v43, 6  ;;  %v228_v46 = vadd.f32 %v226_v45, %v1010_v25 }
 0x2dd   :  { %236 = vrot.lane.b32.xlu2 %v235_v44, %s899_s19  ;;  %v229_v47 = vmul.f32 0.5, %v228_v46 }
 0x2df   :  { %735 = vtanh.f32 %v229_v47 }
 0x2e5   :  { %v736_v48 = vpop.eup %735 }
 0x2e6   :  { %v231_v49 = vmul.f32 0.5, %v736_v48 }
 0x2e8   :  { %v232_v50 = vadd.f32 0.5, %v231_v49 }
 0x2ea   :  { %v246_v57 = vsub.f32 1.0, %v232_v50  ;;  %v254_v60 = vmul.f32 %v252_v56, %v232_v50 }
 0x337   :  { %v237_v51 = vpop.permute.xlu2 %236 }
 0x338   :  { %v239_v52 = vmul.f32 %v237_v51, %v232_v50 }
 0x33a   :  { %241 = vrot.lane.b32.xlu0 %v239_v52, %s899_s19 }
 0x3ac   :  { %v242_v53 = vpop.permute.xlu0 %241 }
 0x3ad   :  { %v244_v54 = vadd.f32 %v242_v53, %v1010_v25 }
 0x3af   :  { %737 = vtanh.f32 %v244_v54 }
 0x3b5   :  { %v738_v55 = vpop.eup %737 }
 0x3b6   :  { %248 = vrot.lane.b32.xlu1 %v738_v55, %s902_s3 }
 0x428   :  { %v249_v58 = vpop.permute.xlu1 %248 }
 0x429   :  { %v251_v59 = vmul.f32 %v249_v58, %v246_v57 }
 0x42b   :  { %v1029_v61 = vadd.f32 %v254_v60, %v251_v59 }
 0x42d   :  { %v263_v62 = vrot.slane %v1029_v61, 2  ;;  %v315_v16 = vrot.slane %v1029_v61, 6 }
 0x42f   :  { %264 = vrot.lane.b32.xlu2 %v263_v62, %s902_s3 }
 0x489   :  { %v265_v63 = vpop.permute.xlu2 %264 }
 0x48a   :  { %705 = vmatmul.msk.f32.vlgmr.msra.gmra.mxu3 %vm145_vm5, %v265_v63 }
 0x50d   :  { %v285_v0 = vpop.f32.mrf.mxu3 }
 0x50e   :  { %v296_v1 = vadd.f32 %v285_v0, %v1006_v22  ;;  %v289_v3 = vrot.slane %v285_v0, 4 }
 0x510   :  { %v298_v2 = vrot.slane %v296_v1, 4  ;;  %v291_v4 = vadd.f32 %v289_v3, %v1010_v25 }
 0x512   :  { %299 = vrot.lane.b32.xlu0 %v298_v2, %s899_s19  ;;  %v292_v5 = vmul.f32 0.5, %v291_v4 }
 0x514   :  { %739 = vtanh.f32 %v292_v5 }
 0x51a   :  { %v740_v6 = vpop.eup %739 }
 0x51b   :  { %v294_v7 = vmul.f32 0.5, %v740_v6 }
 0x51d   :  { %v295_v8 = vadd.f32 0.5, %v294_v7 }
 0x51f   :  { %v309_v15 = vsub.f32 1.0, %v295_v8  ;;  %v317_v18 = vmul.f32 %v315_v16, %v295_v8 }
 0x584   :  { %v300_v10 = vpop.permute.xlu0 %299 }
 0x585   :  { %v302_v11 = vmul.f32 %v300_v10, %v295_v8 }
 0x587   :  { %304 = vrot.lane.b32.xlu1 %v302_v11, %s899_s19 }
 0x5f9   :  { %v305_v12 = vpop.permute.xlu1 %304 }
 0x5fa   :  { %v307_v13 = vadd.f32 %v305_v12, %v1010_v25 }
 0x5fc   :  { %741 = vtanh.f32 %v307_v13 }
 0x602   :  { %v742_v14 = vpop.eup %741 }
 0x603   :  { %311 = vrot.lane.b32.xlu2 %v742_v14, %s902_s3 }
 0x65d   :  { %v312_v17 = vpop.permute.xlu2 %311 }
 0x65e   :  { %v314_v20 = vmul.f32 %v312_v17, %v309_v15 }
 0x660   :  { %v1041_v21 = vadd.f32 %v317_v18, %v314_v20 }
 0x662   :  { %v326_v23 = vrot.slane %v1041_v21, 4  ;;  %v378_v42 = vrot.slane %v1041_v21, 6 }
 0x664   :  { %327 = vrot.lane.b32.xlu0 %v326_v23, %s902_s3 }
 0x6d6   :  { %v328_v24 = vpop.permute.xlu0 %327 }
 0x6d7   :  { %706 = vmatmul.msk.f32.vlgmr.msrb.gmra.mxu1 %vm145_vm5, %v328_v24 }
 0x754   :  { %v348_v26 = vpop.f32.mrf.mxu1 }
 0x755   :  { %v359_v27 = vadd.f32 %v348_v26, %v1006_v22  ;;  %v352_v29 = vrot.slane %v348_v26, 2 }
 0x757   :  { %v361_v28 = vrot.slane %v359_v27, 2  ;;  %v354_v30 = vadd.f32 %v352_v29, %v1010_v25 }
 0x759   :  { %362 = vrot.lane.b32.xlu1 %v361_v28, %s899_s19  ;;  %v355_v31 = vmul.f32 0.5, %v354_v30 }
 0x75b   :  { %743 = vtanh.f32 %v355_v31 }
 0x761   :  { %v744_v32 = vpop.eup %743 }
 0x762   :  { %v357_v33 = vmul.f32 0.5, %v744_v32 }
 0x764   :  { %v358_v34 = vadd.f32 0.5, %v357_v33 }
 0x766   :  { %v372_v41 = vsub.f32 1.0, %v358_v34  ;;  %v380_v44 = vmul.f32 %v378_v42, %v358_v34 }
 0x7cb   :  { %v363_v35 = vpop.permute.xlu1 %362 }
 0x7cc   :  { %v365_v36 = vmul.f32 %v363_v35, %v358_v34 }
 0x7ce   :  { %367 = vrot.lane.b32.xlu2 %v365_v36, %s899_s19 }
 0x7d6   :  { %82 = vperm.xlu2 %728, %v75_v37  }
 0x828   :  { %v368_v38 = vpop.permute.xlu2 %367 }
 0x829   :  { %v370_v39 = vadd.f32 %v368_v38, %v1010_v25 }
 0x82b   :  { %745 = vtanh.f32 %v370_v39 }
 0x830   :  { %v83_v47 = vpop.permute.xlu2 %82 }
 0x831   :  { %v746_v40 = vpop.eup %745  ;;  %vm85_vm6 = vcmp.eq.s32.totalorder %v1000_v19, %v83_v47 }
 0x832   :  { %374 = vrot.lane.b32.xlu0 %v746_v40, %s902_s3 }
 0x83a   :  { %90 = vperm.xlu0 %727, %v75_v37  }
 0x8a4   :  { %v375_v43 = vpop.permute.xlu0 %374 }
 0x8a5   :  { %v377_v45 = vmul.f32 %v375_v43, %v372_v41 }
 0x8a7   :  { %v1056_v46 = vadd.f32 %v380_v44, %v377_v45 }
 0x8a9   :  { %v389_v48 = vrot.slane %v1056_v46, 6 }
 0x8ab   :  { %390 = vrot.lane.b32.xlu1 %v389_v48, %s902_s3 }
 0x8ac   :  { %v91_v25 = vpop.permute.xlu0 %90 }
 0x8ad   :  { %vm93_vm7 = vcmp.eq.s32.totalorder %v1000_v19, %v91_v25 }
 0x8ae   :  { %vm95_vm8 = vmor %vm85_vm6, %vm93_vm7 }
 0x8af   :  { %v701_v49 = vsel %vm95_vm8, 1.0, %v900_v9 }
 0x8b0   :  { %703 = vmatmul.msk.f32.gmra.mxu0 %vm108_vm2, %v701_v49 }
 0x91d   :  { %v391_v50 = vpop.permute.xlu1 %390 }
 0x91e   :  { %707 = vmatmul.msk.f32.vlgmr.msrb.gmra.mxu2 %vm145_vm5, %v391_v50 }
 0x92d   :  { %v1067_v53 = vpop.f32.mrf.mxu0 }
 0x9a1   :  { %v411_v51 = vpop.f32.mrf.mxu2 }
 0x9a2   :  { %v419_v52 = vadd.f32 %v411_v51, %v1006_v22  ;;  %v414_v54 = vadd.f32 %v411_v51, %v1067_v53 }
 0x9a4   :  { %421 = vrot.lane.b32.xlu1 %v419_v52, %s899_s19  ;;  %v415_v55 = vmul.f32 0.5, %v414_v54 }
 0x9a6   :  { %747 = vtanh.f32 %v415_v55 }
 0x9ac   :  { %v748_v19 = vpop.eup %747 }
 0x9ad   :  { %v417_v56 = vmul.f32 0.5, %v748_v19 }
 0x9af   :  { %v418_v57 = vadd.f32 0.5, %v417_v56 }
 0x9b1   :  { %v431_v63 = vsub.f32 1.0, %v418_v57  ;;  %v438_v1 = vmul.f32 %v418_v57, %v389_v48 }
 0xa16   :  { %v422_v9 = vpop.permute.xlu1 %421 }
 0xa17   :  { %v424_v58 = vmul.f32 %v422_v9, %v418_v57 }
 0xa19   :  { %426 = vrot.lane.b32.xlu2 %v424_v58, %s899_s19 }
 0xa73   :  { %v427_v59 = vpop.permute.xlu2 %426 }
 0xa74   :  { %v429_v60 = vadd.f32 %v427_v59, %v1067_v53 }
 0xa76   :  { %749 = vtanh.f32 %v429_v60 }
 0xa7c   :  { %v750_v62 = vpop.eup %749 }
 0xa7d   :  { %433 = vrot.lane.b32.xlu0 %v750_v62, %s902_s3 }
 0xaef   :  { %v434_v0 = vpop.permute.xlu0 %433 }
 0xaf0   :  { %v436_v2 = vmul.f32 %v434_v0, %v431_v63 }
 0xaf2   :  { %v439_v3 = vadd.f32 %v438_v1, %v436_v2 }
 0xaf4   :  { %441 = vrot.lane.b32.xlu1 %v439_v3, %s902_s3  ;;  %v495_v23 = vrot.slane %v439_v3, 6 }
 0xb66   :  { %v442_v4 = vpop.permute.xlu1 %441 }
 0xb67   :  { %445 = vst.msk [vmem:[#allocation8 + $0x8] sm:$0x3] %vm201_vm4, %v442_v4  ;;  %708 = vmatmul.msk.f32.vlgmr.msrb.gmra.mxu3 %vm145_vm5, %v442_v4 }
 0xbea   :  { %v465_v5 = vpop.f32.mrf.mxu3 }
 0xbeb   :  { %v476_v6 = vadd.f32 %v465_v5, %v1006_v22  ;;  %v469_v8 = vrot.slane %v465_v5, 6  ;;  %v631_v5 = vld [vmem:[#allocation7 + $0x10] sm:$0xff] }
 0xbed   :  { %v478_v7 = vrot.slane %v476_v6, 6  ;;  %v471_v10 = vadd.f32 %v469_v8, %v1067_v53  ;;  %v630_v6 = vld [vmem:[#allocation7 + $0x8] sm:$0xff] }
 0xbef   :  { %479 = vrot.lane.b32.xlu2 %v478_v7, %s899_s19  ;;  %v472_v11 = vmul.f32 0.5, %v471_v10 }
 0xbf1   :  { %751 = vtanh.f32 %v472_v11 }
 0xbf7   :  { %v752_v12 = vpop.eup %751 }
 0xbf8   :  { %v474_v13 = vmul.f32 0.5, %v752_v12 }
 0xbfa   :  { %v475_v14 = vadd.f32 0.5, %v474_v13 }
 0xbfc   :  { %v489_v24 = vsub.f32 1.0, %v475_v14  ;;  %v497_v28 = vmul.f32 %v495_v23, %v475_v14 }
 0xc49   :  { %v480_v15 = vpop.permute.xlu2 %479 }
 0xc4a   :  { %v482_v16 = vmul.f32 %v480_v15, %v475_v14 }
 0xc4c   :  { %484 = vrot.lane.b32.xlu0 %v482_v16, %s899_s19 }
 0xcbe   :  { %v485_v17 = vpop.permute.xlu0 %484 }
 0xcbf   :  { %v487_v18 = vadd.f32 %v485_v17, %v1067_v53 }
 0xcc1   :  { %753 = vtanh.f32 %v487_v18 }
 0xcc7   :  { %v754_v20 = vpop.eup %753 }
 0xcc8   :  { %491 = vrot.lane.b32.xlu1 %v754_v20, %s902_s3 }
 0xd3a   :  { %v492_v26 = vpop.permute.xlu1 %491 }
 0xd3b   :  { %v494_v27 = vmul.f32 %v492_v26, %v489_v24 }
 0xd3d   :  { %v498_v29 = vadd.f32 %v497_v28, %v494_v27 }
 0xd3f   :  { %v505_v30 = vrot.slane %v498_v29, 2  ;;  %v557_v48 = vrot.slane %v498_v29, 6 }
 0xd41   :  { %506 = vrot.lane.b32.xlu2 %v505_v30, %s902_s3 }
 0xd9b   :  { %v507_v31 = vpop.permute.xlu2 %506 }
 0xd9c   :  { %709 = vmatmul.msk.f32.vlgmr.msra.gmra.mxu1 %vm145_vm5, %v507_v31 }
 0xe19   :  { %v527_v32 = vpop.f32.mrf.mxu1 }
 0xe1a   :  { %v538_v33 = vadd.f32 %v527_v32, %v1006_v22  ;;  %v531_v35 = vrot.slane %v527_v32, 4 }
 0xe1c   :  { %v540_v34 = vrot.slane %v538_v33, 4  ;;  %v533_v36 = vadd.f32 %v531_v35, %v1067_v53 }
 0xe1e   :  { %541 = vrot.lane.b32.xlu0 %v540_v34, %s899_s19  ;;  %v534_v37 = vmul.f32 0.5, %v533_v36 }
 0xe20   :  { %755 = vtanh.f32 %v534_v37 }
 0xe26   :  { %v756_v38 = vpop.eup %755 }
 0xe27   :  { %v536_v39 = vmul.f32 0.5, %v756_v38 }
 0xe29   :  { %v537_v40 = vadd.f32 0.5, %v536_v39 }
 0xe2b   :  { %v551_v47 = vsub.f32 1.0, %v537_v40  ;;  %v559_v49 = vmul.f32 %v557_v48, %v537_v40 }
 0xe90   :  { %v542_v41 = vpop.permute.xlu0 %541 }
 0xe91   :  { %v544_v42 = vmul.f32 %v542_v41, %v537_v40 }
 0xe93   :  { %546 = vrot.lane.b32.xlu1 %v544_v42, %s899_s19 }
 0xf05   :  { %v547_v43 = vpop.permute.xlu1 %546 }
 0xf06   :  { %v549_v44 = vadd.f32 %v547_v43, %v1067_v53 }
 0xf08   :  { %757 = vtanh.f32 %v549_v44 }
 0xf0e   :  { %v758_v45 = vpop.eup %757 }
 0xf0f   :  { %553 = vrot.lane.b32.xlu2 %v758_v45, %s902_s3 }
 0xf69   :  { %v554_v25 = vpop.permute.xlu2 %553 }
 0xf6a   :  { %v556_v50 = vmul.f32 %v554_v25, %v551_v47 }
 0xf6c   :  { %v560_v51 = vadd.f32 %v559_v49, %v556_v50 }
 0xf6e   :  { %v567_v52 = vrot.slane %v560_v51, 4  ;;  %v619_v8 = vrot.slane %v560_v51, 6 }
 0xf70   :  { %568 = vrot.lane.b32.xlu0 %v567_v52, %s902_s3 }
 0xfe2   :  { %v569_v54 = vpop.permute.xlu0 %568 }
 0xfe3   :  { %710 = vmatmul.msk.f32.vlgmr.msra.gmra.mxu2 %vm145_vm5, %v569_v54 }
0x1066   :  { %v589_v55 = vpop.f32.mrf.mxu2 }
0x1067   :  { %v600_v19 = vadd.f32 %v589_v55, %v1006_v22  ;;  %v593_v57 = vrot.slane %v589_v55, 2 }
0x1069   :  { %v602_v56 = vrot.slane %v600_v19, 2  ;;  %v595_v9 = vadd.f32 %v593_v57, %v1067_v53 }
0x106b   :  { %603 = vrot.lane.b32.xlu1 %v602_v56, %s899_s19  ;;  %v596_v58 = vmul.f32 0.5, %v595_v9 }
0x106d   :  { %759 = vtanh.f32 %v596_v58 }
0x1073   :  { %v760_v59 = vpop.eup %759 }
0x1074   :  { %v598_v60 = vmul.f32 0.5, %v760_v59 }
0x1076   :  { %v599_v62 = vadd.f32 0.5, %v598_v60 }
0x1078   :  { %v613_v7 = vsub.f32 1.0, %v599_v62  ;;  %v621_v11 = vmul.f32 %v619_v8, %v599_v62 }
0x10dd   :  { %v604_v63 = vpop.permute.xlu1 %603 }
0x10de   :  { %v606_v0 = vmul.f32 %v604_v63, %v599_v62 }
0x10e0   :  { %608 = vrot.lane.b32.xlu2 %v606_v0, %s899_s19 }
0x10e8   :  { %257 = vrot.lane.b32.xlu2 %v1029_v61, %s902_s3  ;;  %v632_v61 = vld [vmem:[#allocation7 + $0x18] sm:$0xff] }
0x10e9   :  { %654 = vmatpush.msra.mxu3 %v632_v61 }
0x10eb   :  { %655 = vmatpush.msra.mxu3 %v631_v5 }
0x10ed   :  { %656 = vmatpush.msra.mxu3 %v630_v6 }
0x10f0   :  { %500 = vrot.lane.b32.xlu2 %v498_v29, %s902_s3 }
0x113a   :  { %v609_v22 = vpop.permute.xlu2 %608 }
0x113b   :  { %v611_v1 = vadd.f32 %v609_v22, %v1067_v53  ;;  %v629_v53 = vld [vmem:[#allocation7] sm:$0xff] }
0x113c   :  { %657 = vmatpush.msra.mxu3 %v629_v53 }
0x113d   :  { %761 = vtanh.f32 %v611_v1 }
0x1142   :  { %v258_v2 = vpop.permute.xlu2 %257 }
0x1143   :  { %v762_v3 = vpop.eup %761  ;;  %262 = vst.msk [vmem:[#allocation8] sm:$0xc] %vm261_vm9, %v258_v2 }
0x1144   :  { %615 = vrot.lane.b32.xlu0 %v762_v3, %s902_s3 }
0x114a   :  { %v501_v4 = vpop.permute.xlu2 %500 }
0x114b   :  { %504 = vst.msk [vmem:[#allocation8 + $0x8] sm:$0xc] %vm261_vm9, %v501_v4 }
0x114c   :  { %320 = vrot.lane.b32.xlu0 %v1041_v21, %s902_s3 }
0x1154   :  { %562 = vrot.lane.b32.xlu0 %v560_v51, %s902_s3 }
0x11b6   :  { %v616_v10 = vpop.permute.xlu0 %615 }
0x11b7   :  { %v618_v12 = vmul.f32 %v616_v10, %v613_v7 }
0x11b9   :  { %v622_v13 = vadd.f32 %v621_v11, %v618_v12 }
0x11bb   :  { %v637_v14 = vrot.slane %v622_v13, 6 }
0x11bd   :  { %638 = vrot.lane.b32.xlu1 %v637_v14, %s902_s3 }
0x11be   :  { %v321_v21 = vpop.permute.xlu0 %320 }
0x11bf   :  { %325 = vst.msk [vmem:[#allocation8] sm:$0x30] %vm324_vm10, %v321_v21 }
0x11c5   :  { %383 = vrot.lane.b32.xlu1 %v1056_v46, %s902_s3  ;;  %v730_v46 = vld [vmem:[%s1124_s5] ss:$0 sm:$0xff] }
0x11c6   :  { %v563_v15 = vpop.permute.xlu0 %562 }
0x11c7   :  { %566 = vst.msk [vmem:[#allocation8 + $0x8] sm:$0x30] %vm324_vm10, %v563_v15 }
0x11cd   :  { %624 = vrot.lane.b32.xlu1 %v622_v13, %s902_s3 }
0x122f   :  { %v639_v16 = vpop.permute.xlu1 %638 }
0x1230   :  { %711 = vmatmul.msk.f32.vlgmr.msra.gmra.mxu3 %vm145_vm5, %v639_v16 }
0x1237   :  { %v384_v17 = vpop.permute.xlu1 %383 }
0x1238   :  { %388 = vst.msk [vmem:[#allocation8] sm:$0xc0] %vm387_vm11, %v384_v17 }
0x123f   :  { %v625_v18 = vpop.permute.xlu1 %624 }
0x1240   :  { %628 = vst.msk [vmem:[#allocation8 + $0x8] sm:$0xc0] %vm387_vm11, %v625_v18 }
0x1241   :  { %676 = dma.vmem_to_hbm [thread:$0]  %s669_s22, 256, %s671_s25, [#allocation4], %s904_s26, %s904_s26, %s905_s27  }
0x12b3   :  { %v659_v20 = vpop.f32.mrf.mxu3 }
0x12b4   :  { %v660_v23 = vadd.f32 %v730_v46, %v659_v20 }
0x12b6   :  { %763 = vtanh.f32 %v660_v23 }
0x12bc   :  { %v764_v24 = vpop.eup %763 }
0x12bd   :  { %663 = vst.msk [vmem:[#allocation9] sm:$0x3] %vm201_vm4, %v764_v24 }
0x12be   :  { %687 = dma.vmem_to_hbm [thread:$0]  %s683_s8, 32, %s685_s6, [#allocation10]  }
0x12bf   :  { %889 = dma.done.wait [#allocation4], 256  }
0x12c0   :  { %890 = vsyncadd [#allocation4], 4294967040 }
0x12c1   :  { %891 = dma.done.wait [#allocation10], 32  }
0x12c2   :  { %892 = vsyncadd [#allocation10], 4294967264 }
0x12c3   :  { %696 = vsyncpa [#allocation3], 1 }
0x12c4   :  { %697 = vsyncpa [#allocation6], 1 }
0x12c5   :  { %698 = vsyncpa [#allocation4], 1 }
0x12c6   :  { %699 = vsyncpa [#allocation10], 1 }

</bundles_post_ra>
